<compile_context>
chip_gen: v5e
topology: v5e:2x2
jax: 0.10.0
libtpu: 0.0.40
codegen_flags: <defaults>
</compile_context>

<pallas_src>
import functools

import jax
import jax.numpy as jnp
import numpy as np
from jax import lax
from jax.experimental import pallas as pl
from jax.experimental.pallas import tpu as pltpu


# ---------------------------------------------------------------------------
# Fused PreActBlock kernel
# ---------------------------------------------------------------------------

def _preact_block_kernel(x_ref, w1_ref, w2_ref, vm_ref, o_ref, s1_ref, s2_ref, *,
                         stride, wcin, n_mid, has_shortcut):
    """One grid step == NB images fused into the matmul M dimension.

    x_ref : (1, M, stride*wcin)  activation slab; fused row q packs input rows
            [stride*j, stride*j + stride) (width wcin = W*Cin each).
    w1_ref: (3*wcin, n_mid [+ n_sc])  conv1 ky-bands stacked along K; the fused
            1x1-shortcut columns are nonzero only in the centre K block.
    w2_ref: (3*n_mid, n_mid)          conv2 ky-bands stacked along K.
    vm_ref: (2, M, 1) bf16 {0,1}: [0] = "row j-1 exists" (j>0),
                                   [1] = "row j+1 exists" (j<Hout-1).
    o_ref : (1, M, n_mid) f32 output slab.
    s1/s2 : (M+2, wcin)/(M+2, n_mid) bf16 scratch used to build +-1-row shifts
            with plain offset loads/stores (no rolls, no selection matmuls).
    """
    m = o_ref.shape[1]
    xr = x_ref[0]                                          # (M, stride*wcin)
    ab = jnp.maximum(xr, 0).astype(jnp.bfloat16)           # relu(x), MXU operand

    keep_lo = vm_ref[0]                                    # (M, 1) bf16 {0,1}
    keep_hi = vm_ref[1]

    def banded(a, s_ref):
        # a: (M, K) rows at output resolution -> (M, 3K) = [row j-1 | row j | row j+1]
        # with the pad=1 boundary rows zeroed (zero scratch rows + keep masks).
        z = jnp.zeros((1, a.shape[1]), a.dtype)
        s_ref[pl.ds(0, 1), :] = z
        s_ref[pl.ds(1, m), :] = a
        s_ref[pl.ds(m + 1, 1), :] = z
        lo = s_ref[pl.ds(0, m), :] * keep_lo               # row j-1
        hi = s_ref[pl.ds(2, m), :] * keep_hi               # row j+1
        return jnp.concatenate([lo, a, hi], axis=1)

    # ---- conv1 (+ fused 1x1 shortcut): one matmul, K = 3*W*Cin ----------------
    if stride == 1:
        a1 = banded(ab, s1_ref)
    else:
        center = ab[:, :wcin]                              # input row stride*j   (ky=1)
        upper = ab[:, wcin:2 * wcin]                       # input row stride*j+1 (ky=2)
        prev_last = ab[:, (stride - 1) * wcin:]            # last packed row of fused row q
        z = jnp.zeros((1, wcin), ab.dtype)
        s1_ref[pl.ds(0, 1), :] = z
        s1_ref[pl.ds(1, m), :] = prev_last
        lower = s1_ref[pl.ds(0, m), :] * keep_lo           # input row stride*j-1 (ky=0)
        a1 = jnp.concatenate([lower, center, upper], axis=1)
    r1 = jnp.dot(a1, w1_ref[...], preferred_element_type=jnp.float32)

    # ---- conv2 (stride 1): one matmul, K = 3*Wout*planes ----------------------
    h = jnp.maximum(r1[:, :n_mid], 0.0).astype(jnp.bfloat16)
    r2 = jnp.dot(banded(h, s2_ref), w2_ref[...], preferred_element_type=jnp.float32)

    # ---- residual -------------------------------------------------------------
    if has_shortcut:
        sc = r1[:, n_mid:]                                 # fused 1x1-conv shortcut (f32)
    else:
        sc = xr.astype(jnp.float32)                        # identity: pre-relu x
    o_ref[0] = (r2 + sc).astype(o_ref.dtype)


def preact_block_forward(x_nchw, params, stride, *, grid_blocks=None):
    """NCHW in / NCHW out, like the PyTorch module.

    In a full network the activations would stay in the lane-dense slab layout
    between blocks; the NCHW<->slab conversions here are demo glue only.
    """
    N, Cin, H, W = x_nchw.shape
    Hout, Wout = H // stride, W // stride
    n_mid = params["w2"].shape[1]                          # Wout * planes
    Cm = n_mid // Wout
    has_shortcut = params["has_shortcut"]
    wcin = W * Cin

    if grid_blocks is None:
        # One fat step per v7x TensorCore; on single-core v5e/v6e grid_blocks=1
        # (a single, larger step) is marginally better.
        grid_blocks = 2 if (N % 2 == 0 and N >= 2) else 1
    assert N % grid_blocks == 0
    NB = N // grid_blocks
    M = NB * Hout

    # NCHW -> NHWC -> (grid_blocks, NB*Hout, stride*W*Cin): each fused row packs
    # `stride` consecutive input rows (pure reshape, no extra transpose), so the
    # in-kernel strided row subsample is a static 128-aligned lane slice.
    # Conv-shortcut blocks never need pre-relu f32 x -> feed bf16 (half the DMA).
    act_dtype = jnp.bfloat16 if has_shortcut else jnp.float32
    x_slab = (jnp.transpose(x_nchw, (0, 2, 3, 1))
              .astype(act_dtype)
              .reshape(grid_blocks, M, stride * wcin))

    # Boundary-row "keep" masks (bf16 {0,1}): [0] row j-1 exists, [1] row j+1 exists.
    j = np.arange(M) % Hout
    vmask = jnp.asarray(
        np.stack([(j > 0), (j < Hout - 1)]).astype(np.float32)[:, :, None],
        jnp.bfloat16)

    kernel = functools.partial(_preact_block_kernel, stride=stride, wcin=wcin,
                               n_mid=n_mid, has_shortcut=has_shortcut)

    # NOTE: weight/mask blocks have constant index_maps; single-buffering them
    # (pipeline_mode=pl.Buffered(1)) would trim VMEM further once they grow.
    out_slab = pl.pallas_call(
        kernel,
        out_shape=jax.ShapeDtypeStruct((grid_blocks, M, n_mid), jnp.float32),
        grid=(grid_blocks,),
        in_specs=[
            pl.BlockSpec((1, M, stride * wcin), lambda g: (g, 0, 0)),
            pl.BlockSpec(params["w1"].shape, lambda g: (0, 0)),     # VMEM-resident
            pl.BlockSpec(params["w2"].shape, lambda g: (0, 0)),
            pl.BlockSpec(vmask.shape, lambda g: (0, 0, 0)),
        ],
        out_specs=pl.BlockSpec((1, M, n_mid), lambda g: (g, 0, 0)),
        scratch_shapes=[pltpu.VMEM((M + 2, wcin), jnp.bfloat16),
                        pltpu.VMEM((M + 2, n_mid), jnp.bfloat16)],
        compiler_params=pltpu.CompilerParams(
            dimension_semantics=("parallel",),
            vmem_limit_bytes=32 * 1024 * 1024,
        ),
    )(x_slab, params["w1"], params["w2"], vmask)

    out = out_slab.reshape(N, Hout, Wout, Cm)
    return jnp.transpose(out, (0, 3, 1, 2))                # back to NCHW


# ---------------------------------------------------------------------------
# Host-side folding of conv weights into dot-ready band matrices
# ---------------------------------------------------------------------------

def _banded_conv3x3(w_oihw, w_in, stride):
    """(Cout,Cin,3,3) -> (3*W*Cin, Wout*Cout): ky bands stacked along the
    contraction axis; carries kx taps, W-stride and left/right zero padding."""
    cout, cin = w_oihw.shape[0], w_oihw.shape[1]
    wout = w_in // stride
    m = np.zeros((3, w_in * cin, wout * cout), np.float32)
    for ky in range(3):
        for jw in range(wout):
            for kx in range(3):
                q = stride * jw + kx - 1                   # input column (pad = 1)
                if 0 <= q < w_in:
                    m[ky, q * cin:(q + 1) * cin, jw * cout:(jw + 1) * cout] = \
                        w_oihw[:, :, ky, kx].T
    return m.reshape(3 * w_in * cin, wout * cout)


def _banded_conv1x1(w_oihw, w_in, stride):
    """(Cout,Cin,1,1) -> (W*Cin, Wout*Cout): strided 1x1 conv as one band."""
    cout, cin = w_oihw.shape[0], w_oihw.shape[1]
    wout = w_in // stride
    m = np.zeros((w_in * cin, wout * cout), np.float32)
    for jw in range(wout):
        q = stride * jw
        m[q * cin:(q + 1) * cin, jw * cout:(jw + 1) * cout] = w_oihw[:, :, 0, 0].T
    return m


def _bf16_round(a):
    # Quantize weights to bf16-representable values (kernel feeds the MXU in bf16).
    return np.asarray(jnp.asarray(a, jnp.float32).astype(jnp.bfloat16).astype(jnp.float32))


def make_params(key, inplanes, planes, stride, H, W):
    k1, k2, k3 = jax.random.split(key, 3)
    w1 = _bf16_round(0.1 * jax.random.normal(k1, (planes, inplanes, 3, 3), jnp.float32))
    w2 = _bf16_round(0.1 * jax.random.normal(k2, (planes, planes, 3, 3), jnp.float32))
    Wout = W // stride

    w1_band = _banded_conv3x3(w1, W, stride)               # (3*W*Cin, Wout*planes)
    w2_band = _banded_conv3x3(w2, Wout, 1)                 # (3*Wout*planes, Wout*planes)

    has_shortcut = (stride != 1) or (inplanes != planes)   # expansion == 1
    torch_w = {"conv1": jnp.asarray(w1), "conv2": jnp.asarray(w2), "shortcut": None}
    if has_shortcut:
        ws = _bf16_round(0.1 * jax.random.normal(k3, (planes, inplanes, 1, 1), jnp.float32))
        sc = np.zeros((3 * W * inplanes, Wout * planes), np.float32)
        sc[W * inplanes:2 * W * inplanes, :] = _banded_conv1x1(ws, W, stride)
        w1_band = np.concatenate([w1_band, sc], axis=1)    # fuse shortcut cols (ky=1 band only)
        torch_w["shortcut"] = jnp.asarray(ws)

    params = {"w1": jnp.asarray(w1_band, jnp.bfloat16),
              "w2": jnp.asarray(w2_band, jnp.bfloat16),
              "has_shortcut": has_shortcut}
    return params, torch_w


# ---------------------------------------------------------------------------
# Pure-JAX reference (PyTorch math; mirrors the kernel's bf16-operand /
# f32-accumulate precision policy at the two activation quantization points)
# ---------------------------------------------------------------------------

def reference_forward(x_nchw, tw, stride):
    dn = ("NCHW", "OIHW", "NCHW")
    prec = lax.Precision.HIGHEST
    bf = lambda v: v.astype(jnp.bfloat16).astype(jnp.float32)

    a = bf(jnp.maximum(x_nchw, 0.0))                       # relu(x) as fed to the MXU
    if tw["shortcut"] is not None:
        shortcut = lax.conv_general_dilated(a, tw["shortcut"], (stride, stride),
                                            "VALID", dimension_numbers=dn,
                                            precision=prec)
    else:
        shortcut = x_nchw                                  # identity uses pre-relu x
    h = lax.conv_general_dilated(a, tw["conv1"], (stride, stride),
                                 ((1, 1), (1, 1)), dimension_numbers=dn,
                                 precision=prec)
    h = bf(jnp.maximum(h, 0.0))                            # relu(conv1) as fed to the MXU
    out = lax.conv_general_dilated(h, tw["conv2"], (1, 1),
                                   ((1, 1), (1, 1)), dimension_numbers=dn,
                                   precision=prec)
    return out + shortcut


# ---------------------------------------------------------------------------
# Main
# ---------------------------------------------------------------------------

if __name__ == "__main__":
    key = jax.random.PRNGKey(0)
    kx, kp1, kp2, kp3 = jax.random.split(key, 4)

    N, C, H, W = 2, 8, 16, 16
    x = jax.random.normal(kx, (N, C, H, W), jnp.float32)

    # A: stride=1, inplanes == planes -> identity shortcut (f32 residual).
    params_a, tw_a = make_params(kp1, inplanes=8, planes=8, stride=1, H=H, W=W)
    out_a = jax.block_until_ready(preact_block_forward(x, params_a, stride=1))
    ref_a = reference_forward(x, tw_a, stride=1)
    assert out_a.shape == (N, 8, H, W)
    np.testing.assert_allclose(np.asarray(out_a), np.asarray(ref_a),
                               rtol=1e-3, atol=1e-3)

    # B: stride=2, inplanes != planes -> strided 1x1-conv shortcut (fused matmul).
    params_b, tw_b = make_params(kp2, inplanes=8, planes=16, stride=2, H=H, W=W)
    out_b = jax.block_until_ready(preact_block_forward(x, params_b, stride=2))
    ref_b = reference_forward(x, tw_b, stride=2)
    assert out_b.shape == (N, 16, H // 2, W // 2)
    np.testing.assert_allclose(np.asarray(out_b), np.asarray(ref_b),
                               rtol=1e-3, atol=1e-3)

    # C: stride=1, inplanes != planes -> unstrided 1x1-conv shortcut (fused matmul).
    params_c, tw_c = make_params(kp3, inplanes=8, planes=16, stride=1, H=H, W=W)
    out_c = jax.block_until_ready(preact_block_forward(x, params_c, stride=1))
    ref_c = reference_forward(x, tw_c, stride=1)
    assert out_c.shape == (N, 16, H, W)
    np.testing.assert_allclose(np.asarray(out_c), np.asarray(ref_c),
                               rtol=1e-3, atol=1e-3)

    # Also exercise the single-fat-step blocking preferred on v5e/v6e.
    out_b1 = jax.block_until_ready(
        preact_block_forward(x, params_b, stride=2, grid_blocks=1))
    np.testing.assert_allclose(np.asarray(out_b1), np.asarray(ref_b),
                               rtol=1e-3, atol=1e-3)

    print("KERNEL_OK")
</pallas_src>

<mosaic_0001>
module attributes {stable_mosaic.version = 11 : i64} {
  func.func @_preact_block_kernel(%arg0: i32, %arg1: memref<1x16x128xf32, #tpu.memory_space<vmem>>, %arg2: memref<384x128xbf16, #tpu.memory_space<vmem>>, %arg3: memref<384x128xbf16, #tpu.memory_space<vmem>>, %arg4: memref<2x16x1xbf16, #tpu.memory_space<vmem>>, %arg5: memref<1x16x128xf32, #tpu.memory_space<vmem>>, %arg6: memref<18x128xbf16, #tpu.memory_space<vmem>>, %arg7: memref<18x128xbf16, #tpu.memory_space<vmem>>) attributes {dimension_semantics = [#tpu.dimension_semantics<parallel>], iteration_bounds = array<i64: 2>, scalar_prefetch = 0 : i64, scratch_operands = 2 : i64, tpu.core_type = #tpu.core_type<tc>, window_params = [{transform_indices = @transform_0, window_bounds = array<i64: 1, 16, 128>}, {pipeline_mode = #tpu.pipeline_mode<synchronous>, transform_indices = @transform_1, window_bounds = array<i64: 384, 128>}, {pipeline_mode = #tpu.pipeline_mode<synchronous>, transform_indices = @transform_2, window_bounds = array<i64: 384, 128>}, {pipeline_mode = #tpu.pipeline_mode<synchronous>, transform_indices = @transform_3, window_bounds = array<i64: 2, 16, 1>}, {transform_indices = @transform_4, window_bounds = array<i64: 1, 16, 128>}]} {
    %c0 = arith.constant 0 : index
    %c0_0 = arith.constant 0 : index
    %c0_1 = arith.constant 0 : index
    %0 = vector.load %arg1[%c0, %c0_0, %c0_1] : memref<1x16x128xf32, #tpu.memory_space<vmem>>, vector<1x16x128xf32>
    %1 = vector.shape_cast %0 : vector<1x16x128xf32> to vector<16x128xf32>
    %cst = arith.constant 0.000000e+00 : f32
    %2 = vector.broadcast %cst : f32 to vector<16x128xf32>
    %3 = arith.maximumf %1, %2 : vector<16x128xf32>
    %4 = arith.truncf %3 : vector<16x128xf32> to vector<16x128xbf16>
    %c0_2 = arith.constant 0 : index
    %c0_3 = arith.constant 0 : index
    %c0_4 = arith.constant 0 : index
    %5 = vector.load %arg4[%c0_2, %c0_3, %c0_4] : memref<2x16x1xbf16, #tpu.memory_space<vmem>>, vector<1x16x1xbf16>
    %6 = vector.shape_cast %5 : vector<1x16x1xbf16> to vector<16x1xbf16>
    %c1 = arith.constant 1 : index
    %c0_5 = arith.constant 0 : index
    %c0_6 = arith.constant 0 : index
    %7 = vector.load %arg4[%c1, %c0_5, %c0_6] : memref<2x16x1xbf16, #tpu.memory_space<vmem>>, vector<1x16x1xbf16>
    %8 = vector.shape_cast %7 : vector<1x16x1xbf16> to vector<16x1xbf16>
    %cst_7 = arith.constant 0.000000e+00 : bf16
    %9 = vector.broadcast %cst_7 : bf16 to vector<1x128xbf16>
    %c0_8 = arith.constant 0 : index
    %c0_9 = arith.constant 0 : index
    %10 = vector.load %arg6[%c0_8, %c0_9] : memref<18x128xbf16, #tpu.memory_space<vmem>>, vector<1x128xbf16>
    tpu.vector_store %arg6[%c0_8, %c0_9], %9 {strides = array<i32>} : memref<18x128xbf16, #tpu.memory_space<vmem>>, vector<1x128xbf16>,
    %c1_10 = arith.constant 1 : index
    %c0_11 = arith.constant 0 : index
    %11 = vector.load %arg6[%c1_10, %c0_11] : memref<18x128xbf16, #tpu.memory_space<vmem>>, vector<16x128xbf16>
    tpu.vector_store %arg6[%c1_10, %c0_11], %4 {strides = array<i32>} : memref<18x128xbf16, #tpu.memory_space<vmem>>, vector<16x128xbf16>,
    %c17 = arith.constant 17 : index
    %c0_12 = arith.constant 0 : index
    %12 = vector.load %arg6[%c17, %c0_12] : memref<18x128xbf16, #tpu.memory_space<vmem>>, vector<1x128xbf16>
    tpu.vector_store %arg6[%c17, %c0_12], %9 {strides = array<i32>} : memref<18x128xbf16, #tpu.memory_space<vmem>>, vector<1x128xbf16>,
    %c0_13 = arith.constant 0 : index
    %c0_14 = arith.constant 0 : index
    %13 = vector.load %arg6[%c0_13, %c0_14] : memref<18x128xbf16, #tpu.memory_space<vmem>>, vector<16x128xbf16>
    %14 = vector.broadcast %6 : vector<16x1xbf16> to vector<16x128xbf16>
    %15 = arith.mulf %13, %14 : vector<16x128xbf16>
    %c2 = arith.constant 2 : index
    %c0_15 = arith.constant 0 : index
    %16 = vector.load %arg6[%c2, %c0_15] : memref<18x128xbf16, #tpu.memory_space<vmem>>, vector<16x128xbf16>
    %17 = vector.broadcast %8 : vector<16x1xbf16> to vector<16x128xbf16>
    %18 = arith.mulf %16, %17 : vector<16x128xbf16>
    %19 = tpu.concatenate %15, %4, %18 in 1 : vector<16x128xbf16>, vector<16x128xbf16>, vector<16x128xbf16> -> vector<16x384xbf16>
    %c0_16 = arith.constant 0 : index
    %c0_17 = arith.constant 0 : index
    %20 = vector.load %arg2[%c0_16, %c0_17] : memref<384x128xbf16, #tpu.memory_space<vmem>>, vector<384x128xbf16>
    %cst_18 = arith.constant dense<0.000000e+00> : vector<16x128xf32>
    %21 = tpu.matmul %19, %20, %cst_18 {dimension_numbers = #tpu.dot_dimension_numbers<[1], [0], [0], [1], [0, 0, 1, 1], [], []>} : vector<16x384xbf16>, vector<384x128xbf16>, vector<16x128xf32> -> vector<16x128xf32>
    %cst_19 = arith.constant 0.000000e+00 : f32
    %22 = vector.broadcast %cst_19 : f32 to vector<16x128xf32>
    %23 = arith.maximumf %21, %22 : vector<16x128xf32>
    %24 = arith.truncf %23 : vector<16x128xf32> to vector<16x128xbf16>
    %cst_20 = arith.constant 0.000000e+00 : bf16
    %25 = vector.broadcast %cst_20 : bf16 to vector<1x128xbf16>
    %c0_21 = arith.constant 0 : index
    %c0_22 = arith.constant 0 : index
    %26 = vector.load %arg7[%c0_21, %c0_22] : memref<18x128xbf16, #tpu.memory_space<vmem>>, vector<1x128xbf16>
    tpu.vector_store %arg7[%c0_21, %c0_22], %25 {strides = array<i32>} : memref<18x128xbf16, #tpu.memory_space<vmem>>, vector<1x128xbf16>,
    %c1_23 = arith.constant 1 : index
    %c0_24 = arith.constant 0 : index
    %27 = vector.load %arg7[%c1_23, %c0_24] : memref<18x128xbf16, #tpu.memory_space<vmem>>, vector<16x128xbf16>
    tpu.vector_store %arg7[%c1_23, %c0_24], %24 {strides = array<i32>} : memref<18x128xbf16, #tpu.memory_space<vmem>>, vector<16x128xbf16>,
    %c17_25 = arith.constant 17 : index
    %c0_26 = arith.constant 0 : index
    %28 = vector.load %arg7[%c17_25, %c0_26] : memref<18x128xbf16, #tpu.memory_space<vmem>>, vector<1x128xbf16>
    tpu.vector_store %arg7[%c17_25, %c0_26], %25 {strides = array<i32>} : memref<18x128xbf16, #tpu.memory_space<vmem>>, vector<1x128xbf16>,
    %c0_27 = arith.constant 0 : index
    %c0_28 = arith.constant 0 : index
    %29 = vector.load %arg7[%c0_27, %c0_28] : memref<18x128xbf16, #tpu.memory_space<vmem>>, vector<16x128xbf16>
    %30 = vector.broadcast %6 : vector<16x1xbf16> to vector<16x128xbf16>
    %31 = arith.mulf %29, %30 : vector<16x128xbf16>
    %c2_29 = arith.constant 2 : index
    %c0_30 = arith.constant 0 : index
    %32 = vector.load %arg7[%c2_29, %c0_30] : memref<18x128xbf16, #tpu.memory_space<vmem>>, vector<16x128xbf16>
    %33 = vector.broadcast %8 : vector<16x1xbf16> to vector<16x128xbf16>
    %34 = arith.mulf %32, %33 : vector<16x128xbf16>
    %35 = tpu.concatenate %31, %24, %34 in 1 : vector<16x128xbf16>, vector<16x128xbf16>, vector<16x128xbf16> -> vector<16x384xbf16>
    %c0_31 = arith.constant 0 : index
    %c0_32 = arith.constant 0 : index
    %36 = vector.load %arg3[%c0_31, %c0_32] : memref<384x128xbf16, #tpu.memory_space<vmem>>, vector<384x128xbf16>
    %cst_33 = arith.constant dense<0.000000e+00> : vector<16x128xf32>
    %37 = tpu.matmul %35, %36, %cst_33 {dimension_numbers = #tpu.dot_dimension_numbers<[1], [0], [0], [1], [0, 0, 1, 1], [], []>} : vector<16x384xbf16>, vector<384x128xbf16>, vector<16x128xf32> -> vector<16x128xf32>
    %38 = arith.addf %37, %1 : vector<16x128xf32>
    %c0_34 = arith.constant 0 : index
    %c0_35 = arith.constant 0 : index
    %c0_36 = arith.constant 0 : index
    %39 = vector.load %arg5[%c0_34, %c0_35, %c0_36] : memref<1x16x128xf32, #tpu.memory_space<vmem>>, vector<1x16x128xf32>
    %40 = vector.shape_cast %39 : vector<1x16x128xf32> to vector<16x128xf32>
    %41 = vector.shape_cast %38 : vector<16x128xf32> to vector<1x16x128xf32>
    tpu.vector_store %arg5[%c0_34, %c0_35, %c0_36], %41 {strides = array<i32>} : memref<1x16x128xf32, #tpu.memory_space<vmem>>, vector<1x16x128xf32>,
    return
  }
  func.func @transform_0(%arg0: i32) -> (i32, i32, i32) {
    %c0_i32 = arith.constant 0 : i32
    %c0_i32_0 = arith.constant 0 : i32
    %c0_i32_1 = arith.constant 0 : i32
    return %arg0, %c0_i32, %c0_i32_0 : i32, i32, i32
  }
  func.func @transform_1(%arg0: i32) -> (i32, i32) {
    %c0_i32 = arith.constant 0 : i32
    %c0_i32_0 = arith.constant 0 : i32
    %c0_i32_1 = arith.constant 0 : i32
    return %c0_i32, %c0_i32_0 : i32, i32
  }
  func.func @transform_2(%arg0: i32) -> (i32, i32) {
    %c0_i32 = arith.constant 0 : i32
    %c0_i32_0 = arith.constant 0 : i32
    %c0_i32_1 = arith.constant 0 : i32
    return %c0_i32, %c0_i32_0 : i32, i32
  }
  func.func @transform_3(%arg0: i32) -> (i32, i32, i32) {
    %c0_i32 = arith.constant 0 : i32
    %c0_i32_0 = arith.constant 0 : i32
    %c0_i32_1 = arith.constant 0 : i32
    %c0_i32_2 = arith.constant 0 : i32
    return %c0_i32, %c0_i32_0, %c0_i32_1 : i32, i32, i32
  }
  func.func @transform_4(%arg0: i32) -> (i32, i32, i32) {
    %c0_i32 = arith.constant 0 : i32
    %c0_i32_0 = arith.constant 0 : i32
    %c0_i32_1 = arith.constant 0 : i32
    return %arg0, %c0_i32, %c0_i32_0 : i32, i32, i32
  }
}

</mosaic_0001>

<bundles_post_ra>
// kernel: tpu_custom_call.1
= control target key start
LH: loop header
LB: loop body
LE: loop exit
PB: predicated region body
PF: predicated region fallthrough
CT: control target
= control target key end

     0   :  { %9 = vsyncpa [#allocation5], 0  ;;  %s1835_s0 = inlined_call_operand.hbm [shape: f32[2,16,128], index: 0, kind: input, shape index: {}]   ;;  %s1836_s1 = inlined_call_operand.hbm [shape: bf16[384,128], index: 1, kind: input, shape index: {}]   ;;  %s1837_s2 = inlined_call_operand.hbm [shape: bf16[384,128], index: 2, kind: input, shape index: {}]   ;;  %s1838_s3 = inlined_call_operand.vmem [shape: bf16[2,16,1], index: 3, kind: input, shape index: {}]   ;;  %s1839_s4 = inlined_call_operand.hbm [shape: f32[2,16,128], index: 4, kind: output, shape index: {}]  }
   0x1   :  { %11 = vsyncpa [#allocation5 + $0x1], 0 }
   0x2   :  { %12 = vsyncpa [#allocation8], 0 }
   0x3   :  { %13 = vsyncpa [#allocation6], 0 }
   0x4   :  { %15 = vsyncpa [#allocation6 + $0x1], 0  ;;  %s1600_s15 = smov 0   ;;  %s1602_s16 = smov 0  }
   0x5   :  { %s1604_s17 = smov 0   ;;  %s1606_s18 = smov 0  }
   0x6 LB: > { %s1621_s19 = sadd.s32 4294967295, %s1563_s18   ;;  %s1056_s20 = sadd.s32 4294967294, %s1563_s18   ;;  %s1563_s18 = sphi %s1606_s18, %s1857_s18   ;;  %s1559_s17 = sphi %s1604_s17, %s1856_s17   ;;  %s1555_s16 = sphi %s1602_s16, %s1855_s16   ;;  %s1551_s15 = sphi %s1600_s15, %s1854_s15  }
   0x7   : > { %p41_p0 = scmp.ne.s32.totalorder %s1555_s16, %s1551_s15  ;;  %p42_p1 = scmp.eq.s32.totalorder %s1621_s19, 0 }
   0x8   : > { %p128_p2 = scmp.eq.s32.totalorder %s1621_s19, 1  ;;  %p134_p3 = scmp.eq.s32.totalorder %s1056_s20, 1 }
   0x9   : > { %p1630_p4 = por %p42_p1, %p41_p0  ;;  %p1057_p5 = scmp.ge.s32.totalorder %s1563_s18, 1 }
   0xa   : > { %p1635_p6 = por %p134_p3, %p41_p0  ;;  %p141_p7 = scmp.lt.s32.totalorder %s1563_s18, 3 }
   0xb   : > { %s152_s25 = sshll.u32 %s1836_s1, 4  ;;  %s1565_s27 = smov [#allocation7]   ;;  %s153_s25 = int_to_ptr.hbm [resolvable:$true] %s152_s25 }
   0xc   : > { %p1643_p8 = pnand %p1057_p5, %p141_p7  ;;  %s154_s28 = sshll.u32 %s1565_s27, 4  ;;  %s155_s28 = int_to_ptr.vmem [resolvable:$true] %s154_s28 }
   0xd   : > { %s166_s5 = sshll.u32 %s1837_s2, 4  ;;  %s1566_s6 = smov 64   ;;  %s167_s5 = int_to_ptr.hbm [resolvable:$true] %s166_s5 }
   0xe   : > { %p1338_p9 = pneg %p1643_p8  ;;  %s1567_s7 = smov 4  }
   0xf   : > { %s1568_s8 = smov [#allocation9]   ;;  %s1656_s10 = sadd.s32 1, %s1563_s18  }
  0x10   : > { %p1339_p10 = pnand %p1338_p9, %p42_p1  ;;  %s168_s9 = sshll.u32 %s1568_s8, 4  ;;  %s169_s9 = int_to_ptr.vmem [resolvable:$true] %s168_s9 }
  0x11   : > { %s28_s11 = sadd.s32 1, %s1559_s17  ;;  %s25_s12 = ssub.s32 %s1563_s18, %s1656_s10 }
  0x12   : > { %1341 = dma.hbm_to_vmem [thread:$0]  (!%p1339_p10), %s153_s25, 3072, %s155_s28, [#allocation8], %s1566_s6, %s1566_s6, %s1567_s7  }
  0x13   : > { %1344 = dma.hbm_to_vmem [thread:$0]  (!%p1339_p10), %s167_s5, 3072, %s169_s9, [#allocation8], %s1566_s6, %s1566_s6, %s1567_s7  }
  0x14   : > { %p35_p12 = scmp.ne.s32.totalorder %s1559_s17, %s1555_s16  ;;  %p26_p13 = scmp.eq.s32.totalorder %s25_s12, 0 }
  0x15   : > { %p36_p0 = scmp.eq.s32.totalorder %s1563_s18, 0  ;;  %p1355_p5 = scmp.lt.s32.totalorder %s1563_s18, 2 }
  0x16   : > { %p1666_p3 = por %p128_p2, %p35_p12  ;;  %s185_s20 = sand.u32 1, %s1559_s17  }
  0x17   : > { %s1672_s14 = scalar_select %p26_p13, %s1559_s17, %s28_s11  }
  0x18   : > { %p37_p7 = por %p36_p0, %p35_p12  ;;  %s1061_s23 = sshll.u32 %s185_s20, 4 }
  0x19   : > { %s1268_s24 = sshll.u32 %s1563_s18, 4  ;;  %s189_s29 = scalar_lea.vmem [#allocation4], %s1061_s23 }
  0x1a   : > { %s194_s28 = scalar_lea.hbm %s1835_s0, %s1268_s24  ;;  %s197_s30 = sshll.u32 %s189_s29, 4  ;;  %s198_s30 = int_to_ptr.vmem [resolvable:$true] %s197_s30 }
  0x1b   : > { %s195_s5 = sshll.u32 %s194_s28, 4  ;;  %p1679_p2 = pnand %p1355_p5, %p37_p7  ;;  %s196_s5 = int_to_ptr.hbm [resolvable:$true] %s195_s5 }
  0x1c   : > { %s186_s7 = scalar_lea.sflag [#allocation5], %s185_s20  ;;  %s1463_s8 = sshra.s32 %s196_s5, 4  ;;  %s1464_s8 = int_to_ptr.hbm [resolvable:$true] %s1463_s8 }
  0x1d   : > { %s1465_s9 = scalar_lea.hbm %s1464_s8, 16  ;;  %p1467_p10 = pneg %p1679_p2 }
  0x1e   : > { %p1466_p9 = scmp.ne.s32.totalorder %s1464_s8, %s1465_s9  ;;  %s1470_s23 = scalar_lea.hbm %s1835_s0, 32 }
  0x1f   : > { %p1471_p0 = scmp.lt.s32.totalorder %s1464_s8, %s1835_s0  ;;  %p1472_p5 = scmp.lt.s32.totalorder %s1470_s23, %s1465_s9 }
  0x20   : > { %p1468_p12 = pnand %p1467_p10, %p1466_p9 }
  0x21   : > { %p1473_p7 = por %p1472_p5, %p1471_p0 }
  0x22   : > { %p1469_p13 = pneg %p1468_p12 }
  0x24   : > { %p1474_p11 = pnand %p1473_p7, %p1469_p13 }
  0x26   : > { %1477 = shalt.err (!%p1474_p11)
}
  0x27   : > { %s1569_s20 = smov 128   ;;  %s1570_s27 = smov 8  }
  0x28   : > { %1348 = dma.hbm_to_vmem [thread:$0]  (!%p1679_p2), %s196_s5, 256, %s198_s30, %s186_s7, %s1569_s20, %s1569_s20, %s1570_s27  }
  0x29   : > { %209 = sbr.rel (%p1643_p8) target bundleno = 516 (0x204), region = 36  ;;  %s1696_s28 = sand.u32 (!%p1643_p8), 1, %s1555_s16  }
  0x2a   : > { %s1065_s29 = sshll.u32 (!%p1643_p8), %s1696_s28, 4  ;;  %s212_s8 = scalar_lea.sflag (!%p1643_p8), [#allocation5], %s1696_s28 }
  0x2b   : > { %s1702_s9 = scalar_lea.vmem (!%p1643_p8), [#allocation4], %s1065_s29 }
  0x2e   : > { %1538 = dma.done.wait (%p1630_p4), %s212_s8, 256  }
  0x2f   : > { %1540 = vsyncadd (%p1630_p4), %s212_s8, 4294967040 }
  0x30   : > { %1542 = dma.done.wait (%p42_p1), [#allocation8], 6144  }
  0x31   : > { %1544 = vsyncadd (%p42_p1), [#allocation8], 4294961152  ;;  %v1571_v0 = vmov 0   ;;  %vm263_vm0 = vcmask 1040384   ;;  %vm264_vm1 = vsmask.f32 256 }
  0x32   : > { %1402 = vset.pattern.permute.xlu1 %v1571_v0  ;;  %1401 = vset.pattern.permute.xlu0 %v1571_v0  ;;  %v1069_v1 = vld [vmem:[%s1838_s3 + $0x8] sm:$0xf]  ;;  %v258_v2 = vld [vmem:[%s1838_s3] sm:$0xf]  ;;  %v1276_v3 = vld [vmem:[#allocation7 + $0x38] sm:$0xff]  ;;  %vm291_vm3 = vcmask 1043456  }
  0x33   : > { %338 = vperm.xlu0 %1401, %v1069_v1   ;;  %309 = vperm.xlu1 %1402, %v258_v2   ;;  %v1284_v4 = vld [vmem:[#allocation7 + $0x78] sm:$0xff]  ;;  %vm1720_vm2 = vmand %vm263_vm0, %vm264_vm1  ;;  %v1275_v7 = vld [vmem:[#allocation7 + $0x30] sm:$0xff]  ;;  %vm292_vm4 = vsmask.f32 7938  ;;  %vm269_vm6 = vsmask.f32 4368 }
  0x34   : > { %v1292_v5 = vld [vmem:[#allocation7 + $0xb8] sm:$0xff]  ;;  %591 = vmatpush.bf16.msra.mxu0 %v1276_v3  ;;  %605 = vmatpush.bf16.msra.mxu1 %v1284_v4  ;;  %v1283_v8 = vld [vmem:[#allocation7 + $0x70] sm:$0xff]  ;;  %v266_v10 = vld [vmem:[#allocation2] sm:$0x1]  ;;  %v1572_v61 = vmov 839922192  }
  0x35   : > { %619 = vmatpush.bf16.msra.mxu2 %v1292_v5  ;;  %v1291_v9 = vld [vmem:[#allocation7 + $0xb0] sm:$0xff]  ;;  %v267_v11 = vsel %vm1720_vm2, 0, %v266_v10  ;;  %v259_v13 = vld [vmem:[%s1838_s3 + $0x4] sm:$0xf]  ;;  %vm1741_vm5 = vmand %vm291_vm3, %vm292_vm4  ;;  %v313_v62 = vunpack.c.l.s4 %v1572_v61  ;;  %vm361_vm9 = vcmask 1041408   ;;  %vm394_vm10 = vcmask 1046528  }
  0x36   : > { %v1070_v12 = vld [vmem:[%s1838_s3 + $0xc] sm:$0xf]  ;;  %268 = vst [vmem:[#allocation2] sm:$0x1] %v267_v11  ;;  %v1274_v14 = vld [vmem:[#allocation7 + $0x28] sm:$0xff]  ;;  %v1273_v37 = vld [vmem:[#allocation7 + $0x20] sm:$0xff] }
  0x37   : > { %v1282_v15 = vld [vmem:[#allocation7 + $0x68] sm:$0xff]  ;;  %v1736_v17 = vld [vmem:[%s1702_s9] sm:$0xff]  ;;  %vm1750_vm7 = vmor %vm264_vm1, %vm269_vm6  ;;  %v314_v63 = vunpack.c.0.s8 %v313_v62  ;;  %s1317_s23 = sshll.u32 %s1621_s19, 4  ;;  %s250_s27 = scalar_lea.vmem [#allocation10], %s1065_s29 }
  0x38   : > { %592 = vmatpush.bf16.msra.mxu0 %v1275_v7  ;;  %606 = vmatpush.bf16.msra.mxu1 %v1283_v8  ;;  %v1733_v16 = vld [vmem:[%s1702_s9 + $0x8] sm:$0xff]  ;;  %v254_v19 = vmax.f32 %v1736_v17, 0.0  ;;  %v298_v31 = vld [vmem:[#allocation2 + $0x8] sm:$0x1]  ;;  %v1281_v38 = vld [vmem:[#allocation7 + $0x60] sm:$0xff]  ;;  %s960_s20 = scalar_lea.hbm %s1839_s4, %s1317_s23  ;;  %s961_s8 = sshll.u32 %s250_s27, 4  ;;  %s962_s8 = int_to_ptr.vmem [resolvable:$true] %s961_s8 }
  0x39   : > { %620 = vmatpush.bf16.msra.mxu2 %v1291_v9  ;;  %v255_v18 = vmax.f32 %v1733_v16, 0.0  ;;  %v1290_v41 = vld [vmem:[#allocation7 + $0xa8] sm:$0xff]  ;;  %vm1758_vm8 = vmand %vm263_vm0, %vm292_vm4  ;;  %v1272_v44 = vld [vmem:[#allocation7 + $0x18] sm:$0xff]  ;;  %s963_s9 = sshll.u32 %s960_s20, 4  ;;  %s949_s19 = scalar_lea.sflag [#allocation6], %s1696_s28  ;;  %s964_s9 = int_to_ptr.hbm [resolvable:$true] %s963_s9 }
  0x3a   : > { %v256_v21 = vpack.c.bf16 %v254_v19, %v254_v19  ;;  %v1280_v45 = vld [vmem:[#allocation7 + $0x58] sm:$0xff]  ;;  %v1289_v47 = vld [vmem:[#allocation7 + $0xa0] sm:$0xff]  ;;  %v1271_v48 = vld [vmem:[#allocation7 + $0x10] sm:$0xff]  ;;  %s1507_s26 = sshra.s32 %s964_s9, 4  ;;  %s1513_s6 = scalar_lea.hbm %s1839_s4, 32  ;;  %s1508_s26 = int_to_ptr.hbm [resolvable:$true] %s1507_s26 }
  0x3b   : > { %347 = vperm.xlu0 %1401, %v1070_v12   ;;  %318 = vperm.xlu1 %1402, %v259_v13   ;;  %v257_v20 = vpack.c.bf16 %v255_v18, %v255_v18  ;;  %v1279_v49 = vld [vmem:[#allocation7 + $0x50] sm:$0xff]  ;;  %v1288_v50 = vld [vmem:[#allocation7 + $0x98] sm:$0xff]  ;;  %v1270_v51 = vld [vmem:[#allocation7 + $0x8] sm:$0xff]  ;;  %s1509_s30 = scalar_lea.hbm %s1508_s26, 16  ;;  %p1514_p11 = scmp.lt.s32.totalorder %s1508_s26, %s1839_s4 }
  0x3c   : > { %593 = vmatpush.bf16.msra.mxu0 %v1274_v14  ;;  %607 = vmatpush.bf16.msra.mxu1 %v1282_v15  ;;  %v272_v23 = vshrl.u32 %v256_v21, 16  ;;  %v275_v26 = vshll.u32 %v256_v21, 16  ;;  %v1278_v52 = vld [vmem:[#allocation7 + $0x48] sm:$0xff]  ;;  %v1287_v53 = vld [vmem:[#allocation7 + $0x90] sm:$0xff]  ;;  %v1269_v54 = vld [vmem:[#allocation7] sm:$0xff]  ;;  %v382_v56 = vunpack.c.l.b16 %v256_v21  ;;  %p1510_p1 = scmp.ne.s32.totalorder %s1508_s26, %s1509_s30  ;;  %p1515_p2 = scmp.lt.s32.totalorder %s1513_s6, %s1509_s30 }
  0x3d   : > { %v280_v22 = vshrl.u32 %v257_v20, 16  ;;  %v294_v28 = vld [vmem:[#allocation2] sm:$0xf]  ;;  %v283_v34 = vshll.u32 %v257_v20, 16  ;;  %621 = vmatpush.bf16.msra.mxu2 %v1290_v41  ;;  %v1277_v55 = vld [vmem:[#allocation7 + $0x40] sm:$0xff]  ;;  %v383_v57 = vunpack.c.l.b16 %v257_v20  ;;  %v1299_v61 = vld [vmem:[#allocation9 + $0x30] sm:$0xff] }
  0x3e   : > { %v274_v25 = vrot.slane %v272_v23, 7  ;;  %v1286_v58 = vld [vmem:[#allocation7 + $0x88] sm:$0xff]  ;;  %v1285_v60 = vld [vmem:[#allocation7 + $0x80] sm:$0xff]  ;;  %p1511_p4 = pnand %p1510_p1, %p1666_p3  ;;  %p1516_p9 = por %p1515_p2, %p1514_p11 }
  0x3f   : > { %v282_v24 = vrot.slane %v280_v22, 7  ;;  %v384_v59 = vpack.c.b16 %v383_v57, %v382_v56  ;;  %v637_v56 = vld [vmem:[#allocation3] sm:$0x1]  ;;  %v1301_v62 = vld [vmem:[#allocation9 + $0x40] sm:$0xff] }
  0x40   : > { %v277_v30 = vor.u32 %v275_v26, %v274_v25  ;;  %v278_v35 = vrot.slane %v274_v25, 4  ;;  %594 = vmatpush.bf16.msra.mxu0 %v1273_v37  ;;  %608 = vmatpush.bf16.msra.mxu1 %v1281_v38  ;;  %v638_v57 = vsel %vm1720_vm2, 0, %v637_v56  ;;  %p1512_p8 = pneg %p1511_p4 }
  0x41   : > { %v287_v29 = vrot.slane %v282_v24, 4  ;;  %v285_v36 = vor.u32 %v283_v34, %v282_v24  ;;  %622 = vmatpush.bf16.msra.mxu2 %v1289_v47  ;;  %639 = vst [vmem:[#allocation3] sm:$0x1] %v638_v57 }
  0x42   : > { %v295_v33 = vsel %vm1741_vm5, %v277_v30, %v294_v28  ;;  %p1517_p10 = pnand %p1516_p9, %p1512_p8 }
  0x43   : > { %v299_v32 = vsel %vm1720_vm2, %v287_v29, %v298_v31  ;;  %296 = vst [vmem:[#allocation2] sm:$0xf] %v295_v33  ;;  %v286_v40 = vsel %vm1750_vm7, %v278_v35, %v285_v36 }
  0x44   : > { %300 = vst [vmem:[#allocation2 + $0x8] sm:$0x1] %v299_v32  ;;  %595 = vmatpush.bf16.msra.mxu0 %v1272_v44  ;;  %609 = vmatpush.bf16.msra.mxu1 %v1280_v45 }
  0x45   : > { %297 = vst [vmem:[#allocation2 + $0x4] sm:$0xf] %v286_v40  ;;  %623 = vmatpush.bf16.msra.mxu2 %v1288_v50 }
  0x48   : > { %596 = vmatpush.bf16.msra.mxu0 %v1271_v48  ;;  %610 = vmatpush.bf16.msra.mxu1 %v1279_v49 }
  0x49   : > { %624 = vmatpush.bf16.msra.mxu2 %v1287_v53  ;;  %v1306_v53 = vld [vmem:[#allocation9 + $0x68] sm:$0xff] }
  0x4a   : > { %v333_v9 = vld [vmem:[#allocation2] sm:$0xe] }
  0x4b   : > { %v302_v43 = vld [vmem:[#allocation2 + $0x8] sm:$0x1]  ;;  %v354_v11 = vunpack.c.l.bf16 %v333_v9  ;;  %v1314_v9 = vld [vmem:[#allocation9 + $0xa8] sm:$0xff] }
  0x4c   : > { %v303_v46 = vsel %vm1758_vm8, 0, %v302_v43  ;;  %597 = vmatpush.bf16.msra.mxu0 %v1270_v51  ;;  %611 = vmatpush.bf16.msra.mxu1 %v1278_v52  ;;  %v1319_v2 = vld [vmem:[#allocation2] sm:$0xff]   ;;  %v1308_v51 = vld [vmem:[#allocation9 + $0x78] sm:$0xff]  ;;  %v1307_v52 = vld [vmem:[#allocation9 + $0x70] sm:$0xff] }
  0x4d   : > { %304 = vst [vmem:[#allocation2 + $0x8] sm:$0x1] %v303_v46  ;;  %625 = vmatpush.bf16.msra.mxu2 %v1286_v58  ;;  %v1320_v5 = vunpack.c.l.bf16 %v1319_v2  ;;  %v334_v18 = vld [vmem:[#allocation2 + $0x4] sm:$0xf]  ;;  %v1321_v20 = vunpack.c.h.bf16 %v1319_v2  ;;  %v1303_v58 = vld [vmem:[#allocation9 + $0x50] sm:$0xff]  ;;  %v1296_v2 = vld [vmem:[#allocation9 + $0x18] sm:$0xff] }
  0x4e   : > { %v355_v28 = vunpack.c.l.bf16 %v334_v18  ;;  %v1293_v18 = vld [vmem:[#allocation9] sm:$0xff] }
  0x50   : > { %598 = vmatpush.bf16.msra.mxu0 %v1269_v54  ;;  %612 = vmatpush.bf16.msra.mxu1 %v1277_v55  ;;  %v1305_v54 = vld [vmem:[#allocation9 + $0x60] sm:$0xff]  ;;  %v1304_v55 = vld [vmem:[#allocation9 + $0x58] sm:$0xff] }
  0x51   : > { %626 = vmatpush.bf16.msra.mxu2 %v1285_v60  ;;  %v1302_v60 = vld [vmem:[#allocation9 + $0x48] sm:$0xff] }
  0x53   : > { %613 = vmatmul.bf16.vlgmr.msra.gmra.mxu1 %v384_v59  ;;  %v1300_v59 = vld [vmem:[#allocation9 + $0x38] sm:$0xff] }
  0x54   : > { %v335_v14 = vld [vmem:[#allocation2 + $0x8] sm:$0x1]  ;;  %918 = vmatpush.bf16.msrb.mxu0 %v1308_v51  ;;  %904 = vmatpush.bf16.msra.mxu3 %v1300_v59 }
  0x55   : > { %v356_v23 = vunpack.c.l.bf16 %v335_v14  ;;  %v1313_v14 = vld [vmem:[#allocation9 + $0xa0] sm:$0xff] }
  0x58   : > { %919 = vmatpush.bf16.msrb.mxu0 %v1307_v52  ;;  %905 = vmatpush.bf16.msra.mxu3 %v1299_v61 }
  0x5c   : > { %920 = vmatpush.bf16.msrb.mxu0 %v1306_v53 }
  0x60   : > { %921 = vmatpush.bf16.msrb.mxu0 %v1305_v54 }
  0x64   : > { %922 = vmatpush.bf16.msrb.mxu0 %v1304_v55 }
  0x68   : > { %923 = vmatpush.bf16.msrb.mxu0 %v1303_v58 }
  0x6c   : > { %924 = vmatpush.bf16.msrb.mxu0 %v1302_v60 }
  0x70   : > { %925 = vmatpush.bf16.msrb.mxu0 %v1301_v62 }
  0xa5   : > { %v339_v0 = vpop.permute.xlu0 %338  ;;  %v310_v1 = vpop.permute.xlu1 %309 }
  0xa6   : > { %v344_v3 = vperm.slane %v339_v0, %v314_v63  ;;  %v315_v4 = vperm.slane %v310_v1, %v314_v63  ;;  %v1297_v0 = vld [vmem:[#allocation9 + $0x20] sm:$0xff]  ;;  %v1316_v1 = vld [vmem:[#allocation9 + $0xb8] sm:$0xff] }
  0xa7   : > { %932 = vmatpush.bf16.msrb.mxu1 %v1316_v1 }
  0xa8   : > { %v1764_v7 = vunpack.c.l.bf16 %v315_v4  ;;  %v357_v8 = vunpack.c.l.bf16 %v344_v3  ;;  %v1315_v3 = vld [vmem:[#allocation9 + $0xb0] sm:$0xff] }
  0xaa   : > { %v329_v10 = vmul.f32 %v1320_v5, %v1764_v7  ;;  %v1767_v12 = vrot.slane %v357_v8, 6  ;;  %v1295_v8 = vld [vmem:[#allocation9 + $0x10] sm:$0xff] }
  0xab   : > { %933 = vmatpush.bf16.msrb.mxu1 %v1315_v3 }
  0xac   : > { %v331_v22 = vpack.c.bf16 %v329_v10, %v329_v10  ;;  %v368_v26 = vmul.f32 %v1767_v12, %v354_v11 }
  0xad   : > { %v348_v13 = vpop.permute.xlu0 %347  ;;  %v319_v15 = vpop.permute.xlu1 %318 }
  0xae   : > { %v353_v19 = vperm.slane %v348_v13, %v314_v63  ;;  %v324_v21 = vperm.slane %v319_v15, %v314_v63  ;;  %v376_v34 = vunpack.c.l.b16 %v331_v22  ;;  %v371_v35 = vpack.c.bf16 %v368_v26, %v368_v26  ;;  %v1298_v63 = vld [vmem:[#allocation9 + $0x28] sm:$0xff] }
  0xaf   : > { %906 = vmatpush.bf16.msra.mxu3 %v1298_v63  ;;  %934 = vmatpush.bf16.msrb.mxu1 %v1314_v9  ;;  %v1294_v13 = vld [vmem:[#allocation9 + $0x8] sm:$0xff] }
  0xb0   : > { %v358_v24 = vunpack.c.l.bf16 %v353_v19  ;;  %v1769_v25 = vunpack.c.l.bf16 %v324_v21  ;;  %v389_v44 = vunpack.c.l.b16 %v371_v35  ;;  %v1312_v19 = vld [vmem:[#allocation9 + $0x98] sm:$0xff]  ;;  %v660_v35 = vld [vmem:[#allocation3] sm:$0xf] }
  0xb2   : > { %v1772_v29 = vrot.slane %v358_v24, 6  ;;  %v330_v30 = vmul.f32 %v1321_v20, %v1769_v25 }
  0xb3   : > { %907 = vmatpush.bf16.msra.mxu3 %v1297_v0  ;;  %935 = vmatpush.bf16.msrb.mxu1 %v1313_v14 }
  0xb4   : > { %v1777_v31 = vsel %vm361_vm9, %v1767_v12, %v1772_v29  ;;  %v370_v32 = vmul.f32 %v1772_v29, %v356_v23  ;;  %v332_v33 = vpack.c.bf16 %v330_v30, %v330_v30  ;;  %v1311_v30 = vld [vmem:[#allocation9 + $0x90] sm:$0xff] }
  0xb5   : > { %v369_v36 = vmul.f32 %v1777_v31, %v355_v28 }
  0xb6   : > { %v377_v37 = vunpack.c.l.b16 %v332_v33  ;;  %v373_v38 = vpack.c.bf16 %v370_v32, %v370_v32 }
  0xb7   : > { %v372_v40 = vpack.c.bf16 %v369_v36, %v369_v36  ;;  %908 = vmatpush.bf16.msra.mxu3 %v1296_v2  ;;  %936 = vmatpush.bf16.msrb.mxu1 %v1312_v19  ;;  %v1310_v36 = vld [vmem:[#allocation9 + $0x88] sm:$0xff] }
  0xb8   : > { %v378_v41 = vpack.c.b16 %v377_v37, %v376_v34  ;;  %v391_v43 = vunpack.c.l.b16 %v373_v38 }
  0xb9   : > { %v390_v45 = vunpack.c.l.b16 %v372_v40 }
  0xba   : > { %599 = vmatmul.bf16.vlgmr.msra.gmra.mxu0 %v378_v41  ;;  %v393_v46 = vpack.c.b16 %v391_v43, %v391_v43  ;;  %v1309_v43 = vld [vmem:[#allocation9 + $0x80] sm:$0xff] }
  0xbb   : > { %v392_v47 = vpack.c.b16 %v390_v45, %v389_v44  ;;  %909 = vmatpush.bf16.msra.mxu3 %v1295_v8  ;;  %937 = vmatpush.bf16.msrb.mxu1 %v1311_v30 }
  0xbc   : > { %v396_v48 = vrot.slane %v393_v46, 1 }
  0xbd   : > { %v395_v49 = vrot.slane %v392_v47, 1 }
  0xbf   : > { %v397_v50 = vsel %vm394_vm10, %v395_v49, %v396_v48  ;;  %910 = vmatpush.bf16.msra.mxu3 %v1294_v13  ;;  %938 = vmatpush.bf16.msrb.mxu1 %v1310_v36 }
  0xc0   : > { %627 = vmatmul.bf16.vlgmr.msra.gmra.mxu2 %v397_v50  ;;  %v664_v50 = vld [vmem:[#allocation3 + $0x8] sm:$0x1] }
  0xc3   : > { %911 = vmatpush.bf16.msra.mxu3 %v1293_v18  ;;  %939 = vmatpush.bf16.msrb.mxu1 %v1309_v43 }
  0xd0   : > { %v614_v5 = vpop.f32.mrf.mxu1 }
  0xd8   : > { %v616_v22 = vpop.f32.mrf.mxu1 }
 0x137   : > { %v600_v4 = vpop.f32.mrf.mxu0 }
 0x138   : > { %v615_v10 = vadd.f32 %v614_v5, %v600_v4 }
 0x13f   : > { %v602_v21 = vpop.f32.mrf.mxu0 }
 0x140   : > { %v617_v24 = vadd.f32 %v616_v22, %v602_v21 }
 0x143   : > { %v628_v11 = vpop.f32.mrf.mxu2 }
 0x144   : > { %v629_v15 = vadd.f32 %v628_v11, %v615_v10 }
 0x146   : > { %v633_v20 = vmax.f32 %v629_v15, 0.0 }
 0x148   : > { %v635_v23 = vpack.c.bf16 %v633_v20, %v633_v20 }
 0x14a   : > { %v641_v26 = vshrl.u32 %v635_v23, 16  ;;  %v644_v33 = vshll.u32 %v635_v23, 16  ;;  %v696_v45 = vunpack.c.l.b16 %v635_v23 }
 0x14b   : > { %v630_v28 = vpop.f32.mrf.mxu2 }
 0x14c   : > { %v643_v32 = vrot.slane %v641_v26, 7  ;;  %v631_v34 = vadd.f32 %v630_v28, %v617_v24 }
 0x14e   : > { %v646_v37 = vor.u32 %v644_v33, %v643_v32  ;;  %v634_v38 = vmax.f32 %v631_v34, 0.0  ;;  %v647_v51 = vrot.slane %v643_v32, 4 }
 0x150   : > { %v661_v40 = vsel %vm1741_vm5, %v646_v37, %v660_v35  ;;  %v636_v41 = vpack.c.bf16 %v634_v38, %v634_v38 }
 0x151   : > { %662 = vst [vmem:[#allocation3] sm:$0xf] %v661_v40 }
 0x152   : > { %v649_v44 = vshrl.u32 %v636_v41, 16  ;;  %v697_v46 = vunpack.c.l.b16 %v636_v41  ;;  %v652_v48 = vshll.u32 %v636_v41, 16 }
 0x154   : > { %v651_v47 = vrot.slane %v649_v44, 7  ;;  %v698_v49 = vpack.c.b16 %v697_v46, %v696_v45 }
 0x156   : > { %v654_v52 = vor.u32 %v652_v48, %v651_v47  ;;  %v656_v53 = vrot.slane %v651_v47, 4  ;;  %926 = vmatmul.bf16.vlgmr.msrb.gmra.mxu0 %v698_v49 }
 0x158   : > { %v655_v27 = vsel %vm1750_vm7, %v647_v51, %v654_v52  ;;  %v665_v54 = vsel %vm1720_vm2, %v656_v53, %v664_v50  ;;  %v678_v56 = vld [vmem:[#allocation3] sm:$0xe] }
 0x159   : > { %663 = vst [vmem:[#allocation3 + $0x4] sm:$0xf] %v655_v27  ;;  %v680_v39 = vunpack.c.l.bf16 %v678_v56 }
 0x15a   : > { %666 = vst [vmem:[#allocation3 + $0x8] sm:$0x1] %v665_v54 }
 0x15b   : > { %v682_v3 = vmul.f32 %v680_v39, %v1767_v12 }
 0x15d   : > { %v685_v9 = vpack.c.bf16 %v682_v3, %v682_v3 }
 0x15f   : > { %v703_v11 = vunpack.c.l.b16 %v685_v9 }
 0x160   : > { %v1323_v55 = vld [vmem:[#allocation3] sm:$0xff]  }
 0x161   : > { %v667_v57 = vld [vmem:[#allocation3 + $0x8] sm:$0x1]  ;;  %v1324_v58 = vunpack.c.l.bf16 %v1323_v55  ;;  %v1325_v59 = vunpack.c.h.bf16 %v1323_v55 }
 0x162   : > { %v668_v60 = vsel %vm1758_vm8, 0, %v667_v57 }
 0x163   : > { %669 = vst [vmem:[#allocation3 + $0x8] sm:$0x1] %v668_v60  ;;  %v674_v61 = vmul.f32 %v1324_v58, %v1764_v7  ;;  %v675_v62 = vmul.f32 %v1325_v59, %v1769_v25  ;;  %v683_v6 = vmul.f32 %v1325_v59, %v1777_v31 }
 0x165   : > { %v676_v63 = vpack.c.bf16 %v674_v61, %v674_v61  ;;  %v677_v0 = vpack.c.bf16 %v675_v62, %v675_v62  ;;  %v686_v4 = vpack.c.bf16 %v683_v6, %v683_v6 }
 0x167   : > { %v690_v1 = vunpack.c.l.b16 %v676_v63  ;;  %v691_v2 = vunpack.c.l.b16 %v677_v0  ;;  %v704_v10 = vunpack.c.l.b16 %v686_v4 }
 0x169   : > { %v692_v5 = vpack.c.b16 %v691_v2, %v690_v1  ;;  %v706_v14 = vpack.c.b16 %v704_v10, %v703_v11 }
 0x16a   : > { %v679_v8 = vld [vmem:[#allocation3 + $0x8] sm:$0x1] }
 0x16b   : > { %912 = vmatmul.bf16.vlgmr.msra.gmra.mxu3 %v692_v5  ;;  %v681_v42 = vunpack.c.l.bf16 %v679_v8  ;;  %v708_v15 = vrot.slane %v706_v14, 1 }
 0x16d   : > { %v684_v7 = vmul.f32 %v681_v42, %v1772_v29 }
 0x16f   : > { %v687_v25 = vpack.c.bf16 %v684_v7, %v684_v7 }
 0x171   : > { %v705_v13 = vunpack.c.l.b16 %v687_v25 }
 0x173   : > { %v707_v31 = vpack.c.b16 %v705_v13, %v705_v13 }
 0x175   : > { %v709_v18 = vrot.slane %v707_v31, 1 }
 0x177   : > { %v710_v12 = vsel %vm394_vm10, %v708_v15, %v709_v18 }
 0x178   : > { %940 = vmatmul.bf16.vlgmr.msrb.gmra.mxu1 %v710_v12 }
 0x1d3   : > { %v927_v21 = vpop.f32.mrf.mxu0 }
 0x1ee   : > { %v913_v19 = vpop.f32.mrf.mxu3 }
 0x1ef   : > { %v914_v20 = vadd.f32 %v913_v19, %v1736_v17  ;;  %v929_v17 = vpop.f32.mrf.mxu0 }
 0x1f1   : > { %v928_v22 = vadd.f32 %v927_v21, %v914_v20 }
 0x1f5   : > { %v941_v23 = vpop.f32.mrf.mxu1 }
 0x1f6   : > { %v942_v29 = vadd.f32 %v941_v23, %v928_v22  ;;  %v915_v24 = vpop.f32.mrf.mxu3 }
 0x1f7   : > { %v916_v26 = vadd.f32 %v915_v24, %v1733_v16 }
 0x1f8   : > { %946 = vst [vmem:[%s250_s27] sm:$0xff] %v942_v29 }
 0x1f9   : > { %v930_v28 = vadd.f32 %v929_v17, %v916_v26 }
 0x1fd   : > { %v943_v30 = vpop.f32.mrf.mxu1 }
 0x1fe   : > { %v944_v32 = vadd.f32 %v943_v30, %v930_v28 }
 0x200   : > { %947 = vst [vmem:[%s250_s27 + $0x8] sm:$0xff] %v944_v32 }
 0x201   : > { %1520 = shalt.err (!%p1517_p10)
}
 0x202   : > { %s1573_s28 = smov 128   ;;  %s1574_s11 = smov 8  }
 0x203   : > { %1336 = dma.vmem_to_hbm [thread:$0]  (%p1666_p3), %s962_s8, 256, %s964_s9, %s949_s19, %s1573_s28, %s1573_s28, %s1574_s11  }
 0x204 PF: > { %s978_s12 = sand.u32 1, %s1551_s15   ;;  %p1853_p12 = scmp.ge.s32.totalorder %s1563_s18, 2 }
 0x205   : > { %s979_s23 = scalar_lea.sflag [#allocation6], %s978_s12 }
 0x206   : > { %p1350_p13 = pnand %p1853_p12, %p1635_p6 }
 0x208   : > { %p1351_p0 = pneg %p1350_p13 }
 0x20a   : > { %1546 = dma.done.wait (%p1351_p0), %s979_s23, 256  }
 0x20b   : > { %1548 = vsyncadd (%p1351_p0), %s979_s23, 4294967040  ;;  %p18_p5 = scmp.ge.s32.totalorder %s1656_s10, 4   ;;  %s1854_s15 = smov %s1555_s16 }
 0x20c   : > { %s1855_s16 = smov %s1559_s17  ;;  %s1856_s17 = smov %s1672_s14 }
 0x20d   : > { %s1857_s18 = smov %s1656_s10  ;;  %20 = sbr.rel (!%p18_p5) target bundleno = 6 (0x6), region = 90 }
 0x212   :  { %985 = vsyncpa [#allocation5], 1 }
 0x213   :  { %987 = vsyncpa [#allocation5 + $0x1], 1 }
 0x214   :  { %988 = vsyncpa [#allocation8], 1 }
 0x215   :  { %989 = vsyncpa [#allocation6], 1 }
 0x216   :  { %991 = vsyncpa [#allocation6 + $0x1], 1 }

</bundles_post_ra>
